<compile_context>
chip_gen: v7x
topology: tpu7x:2x2x1
jax: 0.10.0
libtpu: 0.0.40
codegen_flags: <defaults>
</compile_context>

<pallas_src>
import functools

import jax
import jax.numpy as jnp
from jax.experimental import pallas as pl
from jax.experimental.pallas import tpu as pltpu


def _patchify_kernel(idx_ref, s_ref, vcol_ref, bhi_ref, bmid_ref, blo_ref, out_ref):
    """Lane-dense embedding gather via one-hot x block-diagonal table on the MXU.

    idx_ref:  (tile_r, G)   int32 — G = 128 // De consecutive spike indices per row.
    s_ref:    (G, K)        bf16  — S[g, j] = 1 if j // V_pad == g (lane-broadcast matrix).
    vcol_ref: (1, K)        f32   — vcol[0, g*V_pad + v] = v (per-lane constant).
    b*_ref:   (K, 128)      bf16  — hi/mid/lo bf16 split of the block-diagonal table
                                    B[g*V_pad + v, g*De + d] = emb[v, d].
    out_ref:  (tile_r, 128) f32   — out[r, g*De + d] = emb[idx[r, g], d] (lane-dense).
    """
    # MXU lane-broadcast: idx_b[r, j] = idx[r, j // V_pad].
    # Exact: S is 0/1 and idx values are small integers (bf16-exact for V <= 256).
    idx_f = idx_ref[...].astype(s_ref.dtype)
    bcast_precision = (jax.lax.Precision.HIGHEST
                       if s_ref.dtype == jnp.float32 else None)
    idx_b = jnp.dot(idx_f, s_ref[...], preferred_element_type=jnp.float32,
                    precision=bcast_precision)

    # Flat one-hot: onehot[r, g*V_pad + v] = (idx[r, g] == v).  Single broadcast compare
    # against the precomputed lane constant — no per-tile iota / mod on the VPU.
    onehot = (idx_b == vcol_ref[...]).astype(bhi_ref.dtype)

    # Gather: result is already packed 128-lane rows — no relayout, no masked stores.
    # Exactly one nonzero per output column in the contraction, so three bf16 passes
    # reconstruct the f32 table value to ~1 ulp.
    acc = jnp.dot(onehot, bhi_ref[...], preferred_element_type=jnp.float32)
    acc = acc + jnp.dot(onehot, bmid_ref[...], preferred_element_type=jnp.float32)
    acc = acc + jnp.dot(onehot, blo_ref[...], preferred_element_type=jnp.float32)
    out_ref[...] = acc.astype(out_ref.dtype)


def _round_up(x, m):
    return ((x + m - 1) // m) * m


@functools.partial(jax.jit, static_argnames=("tile_rows",))
def spikes_patchifier_forward(spikes, emb_table, *, tile_rows=256):
    """Pallas implementation of SpikesPatchifier.forward.

    spikes:    (bs, T, Pn, Pt) integer spike counts.
    emb_table: (V, De) float32 embedding weights (row padding_idx already zeroed).
    returns:   (bs, T, Pn*Pt*De) float32.
    """
    bs, T, Pn, Pt = spikes.shape
    V, De = emb_table.shape
    assert 128 % De == 0, "spike_embed_dim must divide the 128-lane width"
    # TODO(synk): support De not dividing 128 (would need per-index column padding).
    G = 128 // De                        # indices packed per 128-lane output row
    M = bs * T * Pn * Pt

    # V_pad multiple of max(8, De) keeps K = G*V_pad a multiple of 128 (lane-aligned)
    # while staying as small as possible (less one-hot / MXU work than next-pow2).
    V_pad = _round_up(max(V, 8), max(8, De))
    K = G * V_pad

    # ---- static tiling over lane-dense output rows (pad instead of assert) ------------
    R = -(-M // G)                       # number of 128-lane output rows
    R8 = _round_up(R, 8)
    tr = max(8, min(tile_rows, R8) // 8 * 8)
    if R8 // tr < 2 and R8 >= 16:        # keep >= 2 grid steps for megacore sharding
        tr = max(8, _round_up(-(-R8 // 2), 8))
    R_pad = _round_up(R, tr)
    n_steps = R_pad // tr

    # ---- lane-dense index layout: row r holds G consecutive spike counts --------------
    idx = spikes.reshape(-1).astype(jnp.int32)
    pad_amt = R_pad * G - M
    if pad_amt:
        idx = jnp.pad(idx, (0, pad_amt))                 # padded rows are sliced off below
    idx2d = idx.reshape(R_pad, G)

    # ---- one-time operand expansion (weight-side, tiny) -------------------------------
    gather_dtype = jnp.bfloat16 if V <= 256 else jnp.float32   # indices exact in bf16
    col = jnp.arange(K, dtype=jnp.int32)
    g_of_col = col // V_pad
    v_of_col = col - g_of_col * V_pad
    S = (jnp.arange(G, dtype=jnp.int32)[:, None] == g_of_col[None, :]).astype(gather_dtype)
    vcol = v_of_col.astype(jnp.float32)[None, :]               # (1, K)

    emb_p = jnp.zeros((V_pad, De), jnp.float32).at[:V, :].set(emb_table.astype(jnp.float32))
    eye_g = jnp.eye(G, dtype=jnp.float32)
    B = (eye_g[:, None, :, None] * emb_p[None, :, None, :]).reshape(K, G * De)   # (K, 128)
    # Three-way bf16 split: b_hi + b_mid + b_lo == B to ~2^-24 relative.
    b_hi = B.astype(jnp.bfloat16)
    r1 = B - b_hi.astype(jnp.float32)
    b_mid = r1.astype(jnp.bfloat16)
    b_lo = (r1 - b_mid.astype(jnp.float32)).astype(jnp.bfloat16)

    const_spec2 = pl.BlockSpec((1, K), lambda i: (0, 0))
    table_spec = pl.BlockSpec((K, 128), lambda i: (0, 0))

    out2d = pl.pallas_call(
        _patchify_kernel,
        out_shape=jax.ShapeDtypeStruct((R_pad, 128), jnp.float32),
        grid=(n_steps,),
        in_specs=[
            pl.BlockSpec((tr, G), lambda i: (i, 0)),     # streamed index tiles
            pl.BlockSpec((G, K), lambda i: (0, 0)),      # S: VMEM-resident across grid
            const_spec2,                                 # per-lane v constants: resident
            table_spec, table_spec, table_spec,          # expanded table splits: resident
        ],
        out_specs=pl.BlockSpec((tr, 128), lambda i: (i, 0)),
        compiler_params=pltpu.CompilerParams(
            dimension_semantics=("parallel",)),
    )(idx2d, S, vcol, b_hi, b_mid, b_lo)

    # Row-major identity: out2d.reshape(-1)[m*De + d] == emb[idx_flat[m], d].
    out_flat = out2d.reshape(-1)[: M * De]
    return out_flat.reshape(bs, T, Pn * Pt * De)


def make_embedding_table(key, max_neuron_count, spike_embed_dim, padding_idx):
    """Deterministic nn.Embedding init: N(0,1) weights, padding row zeroed."""
    w = jax.random.normal(key, (max_neuron_count, spike_embed_dim), dtype=jnp.float32)
    w = w.at[padding_idx].set(0.0)
    return w


if __name__ == "__main__":
    # Module hyper-params (small, consistent with __init__):
    dim = 32
    patch_size = (8, 1)                        # (Pn, Pt)
    max_neuron_count = 21
    pad = 5
    spike_embed_dim = round(dim / patch_size[0])   # = 4

    # Small input shapes: (bs, T, Pn, Pt)
    bs, T = 2, 8
    Pn, Pt = patch_size

    key = jax.random.PRNGKey(0)
    k_emb, k_spk = jax.random.split(key)

    emb_table = make_embedding_table(k_emb, max_neuron_count, spike_embed_dim, pad)
    spikes = jax.random.randint(k_spk, (bs, T, Pn, Pt), 0, max_neuron_count,
                                dtype=jnp.int32)

    out = spikes_patchifier_forward(spikes, emb_table)
    out = jax.block_until_ready(out)

    # Pure-JAX reference (embedding gather + flatten), for correctness check.
    idx_ref = spikes.reshape(bs, T, Pn * Pt)
    ref = jnp.take(emb_table, idx_ref, axis=0).reshape(bs, T, Pn * Pt * spike_embed_dim)

    assert out.shape == (bs, T, Pn * Pt * spike_embed_dim), out.shape
    assert jnp.allclose(out, ref, atol=1e-6), "mismatch vs reference embedding lookup"

    print("KERNEL_OK")
</pallas_src>

<mosaic_0001>
module attributes {stable_mosaic.version = 11 : i64} {
  func.func @_patchify_kernel(%arg0: i32, %arg1: memref<8x32xi32, #tpu.memory_space<vmem>>, %arg2: memref<32x768xbf16, #tpu.memory_space<vmem>>, %arg3: memref<1x768xf32, #tpu.memory_space<vmem>>, %arg4: memref<768x128xbf16, #tpu.memory_space<vmem>>, %arg5: memref<768x128xbf16, #tpu.memory_space<vmem>>, %arg6: memref<768x128xbf16, #tpu.memory_space<vmem>>, %arg7: memref<8x128xf32, #tpu.memory_space<vmem>>) attributes {dimension_semantics = [#tpu.dimension_semantics<parallel>], iteration_bounds = array<i64: 1>, scalar_prefetch = 0 : i64, scratch_operands = 0 : i64, tpu.core_type = #tpu.core_type<tc>, window_params = [{transform_indices = @transform_0, window_bounds = array<i64: 8, 32>}, {pipeline_mode = #tpu.pipeline_mode<synchronous>, transform_indices = @transform_1, window_bounds = array<i64: 32, 768>}, {pipeline_mode = #tpu.pipeline_mode<synchronous>, transform_indices = @transform_2, window_bounds = array<i64: 1, 768>}, {pipeline_mode = #tpu.pipeline_mode<synchronous>, transform_indices = @transform_3, window_bounds = array<i64: 768, 128>}, {pipeline_mode = #tpu.pipeline_mode<synchronous>, transform_indices = @transform_4, window_bounds = array<i64: 768, 128>}, {pipeline_mode = #tpu.pipeline_mode<synchronous>, transform_indices = @transform_5, window_bounds = array<i64: 768, 128>}, {transform_indices = @transform_6, window_bounds = array<i64: 8, 128>}]} {
    %c0 = arith.constant 0 : index
    %c0_0 = arith.constant 0 : index
    %0 = vector.load %arg1[%c0, %c0_0] : memref<8x32xi32, #tpu.memory_space<vmem>>, vector<8x32xi32>
    %1 = arith.sitofp %0 : vector<8x32xi32> to vector<8x32xbf16>
    %c0_1 = arith.constant 0 : index
    %c0_2 = arith.constant 0 : index
    %2 = vector.load %arg2[%c0_1, %c0_2] : memref<32x768xbf16, #tpu.memory_space<vmem>>, vector<32x768xbf16>
    %cst = arith.constant dense<0.000000e+00> : vector<8x768xf32>
    %3 = tpu.matmul %1, %2, %cst {dimension_numbers = #tpu.dot_dimension_numbers<[1], [0], [0], [1], [0, 0, 1, 1], [], []>} : vector<8x32xbf16>, vector<32x768xbf16>, vector<8x768xf32> -> vector<8x768xf32>
    %c0_3 = arith.constant 0 : index
    %c0_4 = arith.constant 0 : index
    %4 = vector.load %arg3[%c0_3, %c0_4] : memref<1x768xf32, #tpu.memory_space<vmem>>, vector<1x768xf32>
    %5 = vector.broadcast %4 : vector<1x768xf32> to vector<8x768xf32>
    %6 = arith.cmpf oeq, %3, %5 : vector<8x768xf32>
    %7 = arith.extui %6 : vector<8x768xi1> to vector<8x768xi32>
    %8 = arith.sitofp %7 : vector<8x768xi32> to vector<8x768xf32>
    %9 = arith.truncf %8 : vector<8x768xf32> to vector<8x768xbf16>
    %c0_5 = arith.constant 0 : index
    %c0_6 = arith.constant 0 : index
    %10 = vector.load %arg4[%c0_5, %c0_6] : memref<768x128xbf16, #tpu.memory_space<vmem>>, vector<768x128xbf16>
    %cst_7 = arith.constant dense<0.000000e+00> : vector<8x128xf32>
    %11 = tpu.matmul %9, %10, %cst_7 {dimension_numbers = #tpu.dot_dimension_numbers<[1], [0], [0], [1], [0, 0, 1, 1], [], []>} : vector<8x768xbf16>, vector<768x128xbf16>, vector<8x128xf32> -> vector<8x128xf32>
    %c0_8 = arith.constant 0 : index
    %c0_9 = arith.constant 0 : index
    %12 = vector.load %arg5[%c0_8, %c0_9] : memref<768x128xbf16, #tpu.memory_space<vmem>>, vector<768x128xbf16>
    %cst_10 = arith.constant dense<0.000000e+00> : vector<8x128xf32>
    %13 = tpu.matmul %9, %12, %cst_10 {dimension_numbers = #tpu.dot_dimension_numbers<[1], [0], [0], [1], [0, 0, 1, 1], [], []>} : vector<8x768xbf16>, vector<768x128xbf16>, vector<8x128xf32> -> vector<8x128xf32>
    %14 = arith.addf %11, %13 : vector<8x128xf32>
    %c0_11 = arith.constant 0 : index
    %c0_12 = arith.constant 0 : index
    %15 = vector.load %arg6[%c0_11, %c0_12] : memref<768x128xbf16, #tpu.memory_space<vmem>>, vector<768x128xbf16>
    %cst_13 = arith.constant dense<0.000000e+00> : vector<8x128xf32>
    %16 = tpu.matmul %9, %15, %cst_13 {dimension_numbers = #tpu.dot_dimension_numbers<[1], [0], [0], [1], [0, 0, 1, 1], [], []>} : vector<8x768xbf16>, vector<768x128xbf16>, vector<8x128xf32> -> vector<8x128xf32>
    %17 = arith.addf %14, %16 : vector<8x128xf32>
    %c0_14 = arith.constant 0 : index
    %c0_15 = arith.constant 0 : index
    %18 = vector.load %arg7[%c0_14, %c0_15] : memref<8x128xf32, #tpu.memory_space<vmem>>, vector<8x128xf32>
    tpu.vector_store %arg7[%c0_14, %c0_15], %17 {strides = array<i32>} : memref<8x128xf32, #tpu.memory_space<vmem>>, vector<8x128xf32>,
    return
  }
  func.func @transform_0(%arg0: i32) -> (i32, i32) {
    %c0_i32 = arith.constant 0 : i32
    %c0_i32_0 = arith.constant 0 : i32
    return %arg0, %c0_i32 : i32, i32
  }
  func.func @transform_1(%arg0: i32) -> (i32, i32) {
    %c0_i32 = arith.constant 0 : i32
    %c0_i32_0 = arith.constant 0 : i32
    %c0_i32_1 = arith.constant 0 : i32
    return %c0_i32, %c0_i32_0 : i32, i32
  }
  func.func @transform_2(%arg0: i32) -> (i32, i32) {
    %c0_i32 = arith.constant 0 : i32
    %c0_i32_0 = arith.constant 0 : i32
    %c0_i32_1 = arith.constant 0 : i32
    return %c0_i32, %c0_i32_0 : i32, i32
  }
  func.func @transform_3(%arg0: i32) -> (i32, i32) {
    %c0_i32 = arith.constant 0 : i32
    %c0_i32_0 = arith.constant 0 : i32
    %c0_i32_1 = arith.constant 0 : i32
    return %c0_i32, %c0_i32_0 : i32, i32
  }
  func.func @transform_4(%arg0: i32) -> (i32, i32) {
    %c0_i32 = arith.constant 0 : i32
    %c0_i32_0 = arith.constant 0 : i32
    %c0_i32_1 = arith.constant 0 : i32
    return %c0_i32, %c0_i32_0 : i32, i32
  }
  func.func @transform_5(%arg0: i32) -> (i32, i32) {
    %c0_i32 = arith.constant 0 : i32
    %c0_i32_0 = arith.constant 0 : i32
    %c0_i32_1 = arith.constant 0 : i32
    return %c0_i32, %c0_i32_0 : i32, i32
  }
  func.func @transform_6(%arg0: i32) -> (i32, i32) {
    %c0_i32 = arith.constant 0 : i32
    %c0_i32_0 = arith.constant 0 : i32
    return %arg0, %c0_i32 : i32, i32
  }
}

</mosaic_0001>

<bundles_post_ra>
// kernel: spikes_patchifier_forward.1
= control target key start
LH: loop header
LB: loop body
LE: loop exit
PB: predicated region body
PF: predicated region fallthrough
CT: control target
= control target key end

     0   :  { %v2363_v1 = vmov 0   ;;  %vm99_vm0 = vcmask 261120   ;;  %v228_v50 = vlaneseq  ;;  %s2974_s1 = inlined_call_operand.vmem [shape: bf16[32,768], index: 1, kind: input, shape index: {}]   ;;  %s2975_s0 = inlined_call_operand.vmem [shape: s32[8,32], index: 0, kind: input, shape index: {}]   ;;  %s2976_s4 = inlined_call_operand.vmem [shape: bf16[768,128], index: 4, kind: input, shape index: {}]   ;;  %s2977_s3 = inlined_call_operand.vmem [shape: bf16[768,128], index: 3, kind: input, shape index: {}]   ;;  %s2978_s5 = inlined_call_operand.vmem [shape: bf16[768,128], index: 5, kind: input, shape index: {}]   ;;  %s2979_s2 = inlined_call_operand.vmem [shape: f32[1,768], index: 2, kind: input, shape index: {}]   ;;  %s2980_s6 = inlined_call_operand.vmem [shape: f32[8,128], index: 6, kind: output, shape index: {}]  }
   0x1   :  { %v2201_v0 = vld [vmem:[%s2974_s1 + $0x4] ss:$24 sps:$4 sm:$0xff]   ;;  %135 = vmatprep.mubr.bf16.mxu0 %v2363_v1  ;;  %v2203_v2 = vld [vmem:[%s2974_s1] ss:$24 sps:$4 sm:$0xff]   ;;  %v2204_v3 = vld [vmem:[%s2974_s1 + $0x34] ss:$24 sps:$4 sm:$0xff]  }
   0x2   :  { %103 = vmatprep.subr.bf16.mxu0 %v2201_v0  ;;  %v24_v4 = vld [vmem:[%s2975_s0] sm:$0xff]  ;;  %v2206_v5 = vld [vmem:[%s2974_s1 + $0x30] ss:$24 sps:$4 sm:$0xff]   ;;  %v2212_v10 = vld [vmem:[%s2974_s1 + $0x3c] ss:$24 sps:$4 sm:$0xff]   ;;  %v2544_v51 = vshrl.u32 %v228_v50, 7 }
   0x3   :  { %104 = vmatpush1.bf16.msra.mxu0 %v2203_v2  ;;  %v25_v6 = vcvt.s32.f32 %v24_v4  ;;  %v2209_v7 = vld [vmem:[%s2974_s1 + $0xc] ss:$24 sps:$4 sm:$0xff]   ;;  %v2207_v9 = vld [vmem:[%s2974_s1 + $0x8] ss:$24 sps:$4 sm:$0xff]   ;;  %v2210_v11 = vld [vmem:[%s2974_s1 + $0x38] ss:$24 sps:$4 sm:$0xff]  }
   0x4   :  { %105 = vmatprep.subr.bf16.mxu0 %v2204_v3  ;;  %v2219_v12 = vld [vmem:[%s2976_s4 + $0x40] sm:$0xff]   ;;  %v2221_v14 = vld [vmem:[%s2976_s4 + $0x48] sm:$0xff]   ;;  %v2223_v17 = vld [vmem:[%s2976_s4 + $0x50] sm:$0xff]   ;;  %v230_v52 = vsub.s32 0, %v2544_v51  ;;  %v234_v54 = vsub.s32 1, %v2544_v51  ;;  %v238_v59 = vsub.s32 2, %v2544_v51 }
   0x5   :  { %v26_v8 = vpack.c.bf16 %v25_v6, %v25_v6  ;;  %v2220_v13 = vld [vmem:[%s2976_s4] sm:$0xff]   ;;  %v2215_v15 = vld [vmem:[%s2974_s1 + $0x14] ss:$24 sps:$4 sm:$0xff]   ;;  %2001 = vmatprep.subr.bf16.mxu1 %v2219_v12  ;;  %v2213_v18 = vld [vmem:[%s2974_s1 + $0x10] ss:$24 sps:$4 sm:$0xff]   ;;  %v242_v62 = vsub.s32 3, %v2544_v51 }
   0x6   :  { %2002 = vmatpush3.bf16.msra.mxu1 %v2220_v13  ;;  %v2222_v16 = vld [vmem:[%s2976_s4 + $0x8] sm:$0xff]   ;;  %v2218_v19 = vld [vmem:[%s2974_s1 + $0x44] ss:$24 sps:$4 sm:$0xff]   ;;  %v2225_v20 = vld [vmem:[%s2976_s4 + $0x10] sm:$0xff]   ;;  %v2364_v3 = vmov 1.0|1.0  }
   0x7   :  { %106 = vmatpush1.bf16.msra.mxu0 %v2206_v5  ;;  %2003 = vmatprep.subr.bf16.mxu1 %v2221_v14  ;;  %v2227_v21 = vld [vmem:[%s2976_s4 + $0x58] sm:$0xff]   ;;  %v2224_v23 = vld [vmem:[%s2976_s4 + $0xc0] sm:$0xff]   ;;  %v2228_v27 = vld [vmem:[%s2976_s4 + $0xc8] sm:$0xff]   ;;  %v250_v14 = vsub.s32 5, %v2544_v51 }
   0x8   :  { %144 = vmatprep.subr.bf16.mxu0 %v2209_v7  ;;  %v2216_v22 = vld [vmem:[%s2974_s1 + $0x40] ss:$24 sps:$4 sm:$0xff]   ;;  %v2235_v29 = vld [vmem:[%s2976_s4 + $0x68] sm:$0xff]   ;;  %v2232_v31 = vld [vmem:[%s2976_s4 + $0xd0] sm:$0xff]  }
   0x9   :  { %v2229_v24 = vld [vmem:[%s2976_s4 + $0x18] sm:$0xff]   ;;  %v2231_v25 = vld [vmem:[%s2976_s4 + $0x60] sm:$0xff]   ;;  %v2230_v30 = vld [vmem:[%s2976_s4 + $0x88] sm:$0xff]  }
   0xa   :  { %1812 = vmatmul.mubr.msk.bf16.vlgmr.msra.gmra.mrb[0].mxu0 %vm99_vm0, %v26_v8  ;;  %2004 = vmatpush3.bf16.msra.mxu1 %v2222_v16  ;;  %v2226_v26 = vld [vmem:[%s2976_s4 + $0x80] sm:$0xff]   ;;  %v2234_v32 = vld [vmem:[%s2976_s4 + $0x90] sm:$0xff]   ;;  %v2237_v33 = vld [vmem:[%s2976_s4 + $0x28] sm:$0xff]  }
   0xb   :  { %145 = vmatpush1.bf16.msra.mxu0 %v2207_v9  ;;  %176 = vmatprep.mubr.bf16.mxu0 %v2363_v1  ;;  %v2233_v28 = vld [vmem:[%s2976_s4 + $0x20] sm:$0xff]   ;;  %v2239_v34 = vld [vmem:[%s2976_s4 + $0x70] sm:$0xff]   ;;  %v2236_v35 = vld [vmem:[%s2976_s4 + $0xd8] sm:$0xff]  }
   0xc   :  { %146 = vmatprep.subr.bf16.mxu0 %v2212_v10  ;;  %2005 = vmatprep.subr.bf16.mxu1 %v2223_v17  ;;  %v2241_v36 = vld [vmem:[%s2976_s4 + $0x30] sm:$0xff]   ;;  %v2238_v37 = vld [vmem:[%s2976_s4 + $0x98] sm:$0xff]   ;;  %v2240_v38 = vld [vmem:[%s2976_s4 + $0xe0] sm:$0xff]  }
   0xd   :  { %v2242_v39 = vld [vmem:[%s2976_s4 + $0xa0] sm:$0xff]   ;;  %v2243_v40 = vld [vmem:[%s2976_s4 + $0x78] sm:$0xff]   ;;  %v2244_v41 = vld [vmem:[%s2976_s4 + $0xe8] sm:$0xff]  }
   0xe   :  { %2006 = vmatpush3.bf16.msra.mxu1 %v2225_v20  ;;  %v2245_v42 = vld [vmem:[%s2976_s4 + $0x38] sm:$0xff]   ;;  %v2246_v43 = vld [vmem:[%s2976_s4 + $0xa8] sm:$0xff]   ;;  %v2247_v44 = vld [vmem:[%s2976_s4 + $0xf0] sm:$0xff]  }
   0xf   :  { %147 = vmatpush1.bf16.msra.mxu0 %v2210_v11  ;;  %2007 = vmatprep.subr.bf16.mxu1 %v2227_v21  ;;  %v2248_v45 = vld [vmem:[%s2976_s4 + $0x140] sm:$0xff]   ;;  %v2249_v46 = vld [vmem:[%s2976_s4 + $0xb0] sm:$0xff]   ;;  %v2251_v47 = vld [vmem:[%s2976_s4 + $0xf8] sm:$0xff]  }
  0x10   :  { %185 = vmatprep.subr.bf16.mxu0 %v2215_v15  ;;  %v2253_v48 = vld [vmem:[%s2976_s4 + $0xb8] sm:$0xff]   ;;  %v2256_v49 = vld [vmem:[%s2977_s3 + $0x40] sm:$0xff]   ;;  %v2254_v6 = vld [vmem:[%s2976_s4 + $0x108] sm:$0xff]  }
  0x11   :  { %v2550_v53 = vld [vmem:[%s2979_s2] sm:$0x3f]  ;;  %v2255_v7 = vld [vmem:[%s2976_s4 + $0x150] sm:$0xff]   ;;  %v2259_v16 = vld [vmem:[%s2976_s4 + $0x158] sm:$0xff]  }
  0x12   :  { %1813 = vmatmul.mubr.msk.bf16.vlgmr.msra.gmra.mrb[4].mxu0 %vm99_vm0, %v26_v8  ;;  %2008 = vmatpush3.bf16.msra.mxu1 %v2229_v24  ;;  %v231_v55 = vrot.slane %v2550_v53, %v230_v52  ;;  %v235_v56 = vrot.slane %v2550_v53, %v234_v54  ;;  %v2250_v61 = vld [vmem:[%s2976_s4 + $0x100] sm:$0xff]   ;;  %v239_v4 = vrot.slane %v2550_v53, %v238_v59  ;;  %v2257_v11 = vld [vmem:[%s2976_s4 + $0x110] sm:$0xff]   ;;  %v2262_v20 = vld [vmem:[%s2977_s3 + $0x8] sm:$0xff]  }
  0x13   :  { %186 = vmatpush1.bf16.msra.mxu0 %v2213_v18  ;;  %217 = vmatprep.mubr.bf16.mxu0 %v2363_v1  ;;  %v2252_v1 = vld [vmem:[%s2976_s4 + $0x148] sm:$0xff]   ;;  %v243_v5 = vrot.slane %v2550_v53, %v242_v62  ;;  %v2258_v12 = vld [vmem:[%s2977_s3] sm:$0xff]   ;;  %v251_v21 = vrot.slane %v2550_v53, %v250_v14  ;;  %v2283_v50 = vld [vmem:[%s2977_s3 + $0x78] sm:$0xff]  }
  0x14   :  { %187 = vmatprep.subr.bf16.mxu0 %v2218_v19  ;;  %2009 = vmatprep.subr.bf16.mxu1 %v2231_v25  ;;  %v2260_v18 = vld [vmem:[%s2977_s3 + $0x48] sm:$0xff]   ;;  %v2261_v19 = vld [vmem:[%s2976_s4 + $0x118] sm:$0xff]   ;;  %v2287_v54 = vld [vmem:[%s2977_s3 + $0xd0] sm:$0xff]  }
  0x15   :  { %v2285_v52 = vld [vmem:[%s2977_s3 + $0x38] sm:$0xff]   ;;  %v2292_v59 = vld [vmem:[%s2977_s3 + $0x148] sm:$0xff]   ;;  %v2295_v62 = vld [vmem:[%s2977_s3 + $0xe0] sm:$0xff]  }
  0x16   :  { %2010 = vmatpush3.bf16.msra.mxu1 %v2233_v28  ;;  %v2307_v14 = vld [vmem:[%s2977_s3 + $0xf8] sm:$0xff]   ;;  %v2322_v63 = vld [vmem:[%s2978_s5 + $0x80] sm:$0xff]   ;;  %v2330_v15 = vld [vmem:[%s2978_s5 + $0x90] sm:$0xff]  }
  0x17   :  { %188 = vmatpush1.bf16.msra.mxu0 %v2216_v22  ;;  %2011 = vmatprep.subr.bf16.mxu1 %v2235_v29  ;;  %v2263_v22 = vld [vmem:[%s2976_s4 + $0x160] sm:$0xff]   ;;  %v2267_v29 = vld [vmem:[%s2976_s4 + $0x168] sm:$0xff]   ;;  %v2351_v2 = vld [vmem:[%s2978_s5 + $0x150] sm:$0xff]  }
  0x18   :  { %2023 = vmatprep.subr.bf16.mxu0 %v2224_v23  ;;  %v2264_v23 = vld [vmem:[%s2977_s3 + $0x50] sm:$0xff]   ;;  %v2357_v10 = vld [vmem:[%s2978_s5 + $0x168] sm:$0xff]  }
  0x1a   :  { %1814 = vmatmul.mubr.msk.bf16.vlgmr.msra.gmra.mrb[8].mxu0 %vm99_vm0, %v26_v8  ;;  %2012 = vmatpush3.bf16.msra.mxu1 %v2237_v33  ;;  %v2269_v33 = vld [vmem:[%s2976_s4 + $0x128] sm:$0xff]  }
  0x1b   :  { %2024 = vmatpush3.bf16.msra.mxu0 %v2226_v26  ;;  %2013 = vmatprep.subr.bf16.mxu1 %v2239_v34  ;;  %v2265_v26 = vld [vmem:[%s2976_s4 + $0x120] sm:$0xff]   ;;  %v2270_v34 = vld [vmem:[%s2977_s3 + $0x18] sm:$0xff]  }
  0x1c   :  { %2025 = vmatprep.subr.bf16.mxu0 %v2228_v27  ;;  %v2266_v27 = vld [vmem:[%s2977_s3 + $0x10] sm:$0xff]  }
  0x1e   :  { %2014 = vmatpush3.bf16.msra.mxu1 %v2241_v36  ;;  %v2272_v36 = vld [vmem:[%s2977_s3 + $0x60] sm:$0xff]  }
  0x1f   :  { %2026 = vmatpush3.bf16.msra.mxu0 %v2230_v30  ;;  %2015 = vmatprep.subr.bf16.mxu1 %v2243_v40  ;;  %v2268_v30 = vld [vmem:[%s2977_s3 + $0x58] sm:$0xff]  }
  0x20   :  { %2027 = vmatprep.subr.bf16.mxu0 %v2232_v31  ;;  %v2354_v31 = vld [vmem:[%s2978_s5 + $0x118] sm:$0xff]  }
  0x22   :  { %2016 = vmatpush3.bf16.msra.mxu1 %v2245_v42  ;;  %v2276_v42 = vld [vmem:[%s2977_s3 + $0x68] sm:$0xff]  }
  0x23   :  { %2028 = vmatpush3.bf16.msra.mxu0 %v2234_v32  ;;  %2045 = vmatprep.subr.bf16.mxu1 %v2248_v45  ;;  %v2279_v45 = vld [vmem:[%s2977_s3 + $0x70] sm:$0xff]  }
  0x24   :  { %2029 = vmatprep.subr.bf16.mxu0 %v2236_v35  ;;  %v2271_v35 = vld [vmem:[%s2976_s4 + $0x170] sm:$0xff]  }
  0x27   :  { %2030 = vmatpush3.bf16.msra.mxu0 %v2238_v37  ;;  %v246_v37 = vsub.s32 4, %v2544_v51  ;;  %v2284_v51 = vld [vmem:[%s2977_s3 + $0xc8] sm:$0xff]  }
  0x28   :  { %2031 = vmatprep.subr.bf16.mxu0 %v2240_v38  ;;  %v2273_v38 = vld [vmem:[%s2976_s4 + $0x130] sm:$0xff]  }
  0x29   :  { %v247_v40 = vrot.slane %v2550_v53, %v246_v37  ;;  %v2286_v53 = vld [vmem:[%s2977_s3 + $0x88] sm:$0xff]   ;;  %v2329_v37 = vld [vmem:[%s2978_s5 + $0x20] sm:$0xff]  }
  0x2b   :  { %2032 = vmatpush3.bf16.msra.mxu0 %v2242_v39  ;;  %v2274_v39 = vld [vmem:[%s2977_s3 + $0x20] sm:$0xff]  }
  0x2c   :  { %2033 = vmatprep.subr.bf16.mxu0 %v2244_v41  ;;  %v2275_v41 = vld [vmem:[%s2976_s4 + $0x178] sm:$0xff]  }
  0x2f   :  { %2034 = vmatpush3.bf16.msra.mxu0 %v2246_v43  ;;  %v2277_v43 = vld [vmem:[%s2976_s4 + $0x138] sm:$0xff]  }
  0x30   :  { %2035 = vmatprep.subr.bf16.mxu0 %v2247_v44  ;;  %v2278_v44 = vld [vmem:[%s2977_s3 + $0x28] sm:$0xff]  }
  0x33   :  { %2036 = vmatpush3.bf16.msra.mxu0 %v2249_v46  ;;  %v2280_v46 = vld [vmem:[%s2977_s3 + $0xc0] sm:$0xff]  }
  0x34   :  { %2037 = vmatprep.subr.bf16.mxu0 %v2251_v47 }
  0x37   :  { %2038 = vmatpush3.bf16.msra.mxu0 %v2253_v48  ;;  %v2281_v48 = vld [vmem:[%s2977_s3 + $0x30] sm:$0xff]  }
  0x38   :  { %2067 = vmatprep.subr.bf16.mxu0 %v2256_v49  ;;  %v2282_v49 = vld [vmem:[%s2977_s3 + $0x80] sm:$0xff]  }
  0xdd   :  { %v137_v57 = vpop.f32.mrb[0].mxu0 }
  0xde   :  { %vm258_vm1 = vcmp.eq.f32.partialorder %v137_v57, %v231_v55  ;;  %v139_v58 = vpop.f32.mrb[1].mxu0  ;;  %v2288_v55 = vld [vmem:[%s2977_s3 + $0x140] sm:$0xff]  }
  0xdf   :  { %vm259_vm2 = vcmp.eq.f32.partialorder %v139_v58, %v235_v56  ;;  %v141_v60 = vpop.f32.mrb[2].mxu0  ;;  %vm2567_vm4 = vmpackc.low %vm258_vm1, %vm258_vm1  ;;  %v2289_v56 = vld [vmem:[%s2977_s3 + $0x90] sm:$0xff]   ;;  %v2290_v57 = vld [vmem:[%s2977_s3 + $0x100] sm:$0xff]  }
  0xe0   :  { %vm2560_vm3 = vmpackc.low %vm259_vm2, %vm259_vm2  ;;  %v142_v0 = vpop.f32.mrb[3].mxu0  ;;  %v2291_v58 = vld [vmem:[%s2977_s3 + $0xd8] sm:$0xff]  }
  0xe1   :  { %1870 = vmatprep.mubr.msk.bf16.mxu1 %vm2560_vm3, %v2364_v3  ;;  %v2293_v60 = vld [vmem:[%s2977_s3 + $0x98] sm:$0xff]   ;;  %v2296_v0 = vld [vmem:[%s2977_s3 + $0x150] sm:$0xff]  }
  0xe2   :  { %1872 = vmatmul.mubr.msk.bf16.vlgmr.msra.gmra.mrb[0].mxu1 %vm2567_vm4, %v2364_v3 }
  0xe3   :  { %2046 = vmatpush3.bf16.msra.mxu1 %v2250_v61  ;;  %v2294_v61 = vld [vmem:[%s2977_s3 + $0x108] sm:$0xff]  }
  0xe4   :  { %2047 = vmatprep.subr.bf16.mxu1 %v2252_v1  ;;  %v2297_v1 = vld [vmem:[%s2977_s3 + $0xa0] sm:$0xff]  }
  0xe5   :  { %v178_v8 = vpop.f32.mrb[4].mxu0 }
  0xe6   :  { %vm260_vm5 = vcmp.eq.f32.partialorder %v178_v8, %v239_v4  ;;  %v180_v9 = vpop.f32.mrb[5].mxu0  ;;  %v2298_v4 = vld [vmem:[%s2977_s3 + $0x110] sm:$0xff]   ;;  %v2302_v8 = vld [vmem:[%s2977_s3 + $0x118] sm:$0xff]  }
  0xe7   :  { %vm2585_vm6 = vmpackc.low %vm260_vm5, %vm260_vm5  ;;  %vm261_vm7 = vcmp.eq.f32.partialorder %v180_v9, %v243_v5  ;;  %2048 = vmatpush3.bf16.msra.mxu1 %v2254_v6  ;;  %v182_v13 = vpop.f32.mrb[6].mxu0  ;;  %v2299_v5 = vld [vmem:[%s2977_s3 + $0xe8] sm:$0xff]   ;;  %v2300_v6 = vld [vmem:[%s2977_s3 + $0x158] sm:$0xff]  }
  0xe8   :  { %vm2596_vm8 = vmpackc.low %vm261_vm7, %vm261_vm7  ;;  %2049 = vmatprep.subr.bf16.mxu1 %v2255_v7  ;;  %v183_v17 = vpop.f32.mrb[7].mxu0  ;;  %v2301_v7 = vld [vmem:[%s2977_s3 + $0xa8] sm:$0xff]   ;;  %v2303_v9 = vld [vmem:[%s2977_s3 + $0xf0] sm:$0xff]  }
  0xe9   :  { %1874 = vmatprep.mubr.msk.bf16.mxu0 %vm2596_vm8, %v2364_v3  ;;  %v2306_v13 = vld [vmem:[%s2977_s3 + $0x120] sm:$0xff]   ;;  %v2309_v17 = vld [vmem:[%s2977_s3 + $0xb8] sm:$0xff]  }
  0xea   :  { %1876 = vmatmul.mubr.msk.bf16.vlgmr.msra.gmra.mrb[12].mxu0 %vm2585_vm6, %v2364_v3 }
  0xeb   :  { %2050 = vmatpush3.bf16.msra.mxu1 %v2257_v11  ;;  %2068 = vmatpush3.bf16.msra.mxu0 %v2258_v12  ;;  %v2304_v11 = vld [vmem:[%s2977_s3 + $0x160] sm:$0xff]   ;;  %v2305_v12 = vld [vmem:[%s2977_s3 + $0xb0] sm:$0xff]  }
  0xec   :  { %1930 = vmatprep.mubr.msk.bf16.mxu0 %vm2560_vm3, %v2364_v3  ;;  %2051 = vmatprep.subr.bf16.mxu1 %v2259_v16  ;;  %v2308_v16 = vld [vmem:[%s2977_s3 + $0x168] sm:$0xff]  }
  0xed   :  { %2069 = vmatprep.subr.bf16.mxu0 %v2260_v18  ;;  %v219_v24 = vpop.f32.mrb[8].mxu0  ;;  %v2310_v18 = vld [vmem:[%s2977_s3 + $0x128] sm:$0xff]  }
  0xee   :  { %v221_v25 = vpop.f32.mrb[9].mxu0  ;;  %vm262_vm11 = vcmp.eq.f32.partialorder %v219_v24, %v247_v40  ;;  %v2316_v24 = vld [vmem:[%s2978_s5 + $0x48] sm:$0xff]  }
  0xef   :  { %2052 = vmatpush3.bf16.msra.mxu1 %v2261_v19  ;;  %2070 = vmatpush3.bf16.msra.mxu0 %v2262_v20  ;;  %vm263_vm9 = vcmp.eq.f32.partialorder %v221_v25, %v251_v21  ;;  %v223_v28 = vpop.f32.mrb[10].mxu0  ;;  %vm2685_vm12 = vmpackc.low %vm262_vm11, %vm262_vm11  ;;  %v2311_v19 = vld [vmem:[%s2977_s3 + $0x170] sm:$0xff]   ;;  %v2312_v20 = vld [vmem:[%s2978_s5 + $0x40] sm:$0xff]  }
  0xf0   :  { %2053 = vmatprep.subr.bf16.mxu1 %v2263_v22  ;;  %2071 = vmatprep.subr.bf16.mxu0 %v2264_v23  ;;  %vm2640_vm10 = vmpackc.low %vm263_vm9, %vm263_vm9  ;;  %v224_v32 = vpop.f32.mrb[11].mxu0  ;;  %v2313_v21 = vld [vmem:[%s2977_s3 + $0x130] sm:$0xff]   ;;  %v2314_v22 = vld [vmem:[%s2978_s5] sm:$0xff]  }
  0xf1   :  { %1878 = vmatprep.mubr.msk.bf16.mxu1 %vm2640_vm10, %v2364_v3  ;;  %v2315_v23 = vld [vmem:[%s2977_s3 + $0x178] sm:$0xff]   ;;  %v2320_v28 = vld [vmem:[%s2978_s5 + $0xc0] sm:$0xff]   ;;  %v2324_v32 = vld [vmem:[%s2978_s5 + $0xc8] sm:$0xff]  }
  0xf2   :  { %v2317_v25 = vld [vmem:[%s2977_s3 + $0x138] sm:$0xff]   ;;  %v2333_v40 = vld [vmem:[%s2978_s5 + $0x28] sm:$0xff]  }
  0xf3   :  { %2054 = vmatpush3.bf16.msra.mxu1 %v2265_v26  ;;  %2072 = vmatpush3.bf16.msra.mxu0 %v2266_v27  ;;  %v2318_v26 = vld [vmem:[%s2978_s5 + $0x8] sm:$0xff]   ;;  %v2319_v27 = vld [vmem:[%s2978_s5 + $0x50] sm:$0xff]  }
  0xf4   :  { %2055 = vmatprep.subr.bf16.mxu1 %v2267_v29  ;;  %2073 = vmatprep.subr.bf16.mxu0 %v2268_v30  ;;  %v2321_v29 = vld [vmem:[%s2978_s5 + $0x10] sm:$0xff]   ;;  %v2323_v30 = vld [vmem:[%s2978_s5 + $0x58] sm:$0xff]  }
  0xf7   :  { %2056 = vmatpush3.bf16.msra.mxu1 %v2269_v33  ;;  %2074 = vmatpush3.bf16.msra.mxu0 %v2270_v34  ;;  %v2325_v33 = vld [vmem:[%s2978_s5 + $0x18] sm:$0xff]   ;;  %v2326_v34 = vld [vmem:[%s2978_s5 + $0x88] sm:$0xff]  }
  0xf8   :  { %2057 = vmatprep.subr.bf16.mxu1 %v2271_v35  ;;  %2075 = vmatprep.subr.bf16.mxu0 %v2272_v36  ;;  %v2327_v35 = vld [vmem:[%s2978_s5 + $0x60] sm:$0xff]   ;;  %v2328_v36 = vld [vmem:[%s2978_s5 + $0xd0] sm:$0xff]  }
  0xfb   :  { %2058 = vmatpush3.bf16.msra.mxu1 %v2273_v38  ;;  %2076 = vmatpush3.bf16.msra.mxu0 %v2274_v39  ;;  %v2331_v38 = vld [vmem:[%s2978_s5 + $0x68] sm:$0xff]   ;;  %v2332_v39 = vld [vmem:[%s2978_s5 + $0xd8] sm:$0xff]  }
  0xfc   :  { %2059 = vmatprep.subr.bf16.mxu1 %v2275_v41  ;;  %2077 = vmatprep.subr.bf16.mxu0 %v2276_v42  ;;  %v2334_v41 = vld [vmem:[%s2978_s5 + $0x98] sm:$0xff]   ;;  %v2335_v42 = vld [vmem:[%s2978_s5 + $0x70] sm:$0xff]  }
  0xff   :  { %2060 = vmatpush3.bf16.msra.mxu1 %v2277_v43  ;;  %2078 = vmatpush3.bf16.msra.mxu0 %v2278_v44  ;;  %v2336_v43 = vld [vmem:[%s2978_s5 + $0xe0] sm:$0xff]   ;;  %v2337_v44 = vld [vmem:[%s2978_s5 + $0x30] sm:$0xff]  }
 0x100   :  { %2079 = vmatprep.subr.bf16.mxu0 %v2279_v45  ;;  %2089 = vmatprep.subr.bf16.mxu1 %v2280_v46  ;;  %v2338_v45 = vld [vmem:[%s2978_s5 + $0xa0] sm:$0xff]   ;;  %v2339_v46 = vld [vmem:[%s2978_s5 + $0x78] sm:$0xff]  }
 0x102   :  { %1880 = vmatmul.mubr.msk.bf16.vlgmr.msra.gmra.mrb[4].mxu1 %vm2685_vm12, %v2364_v3 }
 0x103   :  { %2080 = vmatpush3.bf16.msra.mxu0 %v2281_v48  ;;  %2090 = vmatpush3.bf16.msra.mxu1 %v2282_v49  ;;  %v2340_v48 = vld [vmem:[%s2978_s5 + $0xe8] sm:$0xff]   ;;  %v2341_v49 = vld [vmem:[%s2978_s5 + $0x38] sm:$0xff]  }
 0x104   :  { %1934 = vmatprep.mubr.msk.bf16.mxu1 %vm2596_vm8, %v2364_v3  ;;  %2081 = vmatprep.subr.bf16.mxu0 %v2283_v50  ;;  %v2342_v50 = vld [vmem:[%s2978_s5 + $0xa8] sm:$0xff]  }
 0x105   :  { %2091 = vmatprep.subr.bf16.mxu1 %v2284_v51  ;;  %v2343_v51 = vld [vmem:[%s2978_s5 + $0xf0] sm:$0xff]  }
 0x107   :  { %2082 = vmatpush3.bf16.msra.mxu0 %v2285_v52  ;;  %2092 = vmatpush3.bf16.msra.mxu1 %v2286_v53  ;;  %v2344_v52 = vld [vmem:[%s2978_s5 + $0x140] sm:$0xff]   ;;  %v2345_v53 = vld [vmem:[%s2978_s5 + $0xb0] sm:$0xff]  }
 0x108   :  { %2093 = vmatprep.subr.bf16.mxu1 %v2287_v54  ;;  %2111 = vmatprep.subr.bf16.mxu0 %v2288_v55  ;;  %v2346_v54 = vld [vmem:[%s2978_s5 + $0x100] sm:$0xff]   ;;  %v2347_v55 = vld [vmem:[%s2978_s5 + $0xf8] sm:$0xff]  }
 0x10a   :  { %1932 = vmatmul.mubr.msk.bf16.vlgmr.msra.gmra.mrb[16].mxu0 %vm2567_vm4, %v2364_v3 }
 0x10b   :  { %2094 = vmatpush3.bf16.msra.mxu1 %v2289_v56  ;;  %2112 = vmatpush3.bf16.msra.mxu0 %v2290_v57  ;;  %v2348_v56 = vld [vmem:[%s2978_s5 + $0x148] sm:$0xff]   ;;  %v2349_v57 = vld [vmem:[%s2978_s5 + $0xb8] sm:$0xff]  }
 0x10c   :  { %1938 = vmatprep.mubr.msk.bf16.mxu0 %vm2640_vm10, %v2364_v3  ;;  %2095 = vmatprep.subr.bf16.mxu1 %v2291_v58  ;;  %v2350_v58 = vld [vmem:[%s2978_s5 + $0x108] sm:$0xff]  }
 0x10d   :  { %2113 = vmatprep.subr.bf16.mxu0 %v2292_v59  ;;  %v2352_v59 = vld [vmem:[%s2978_s5 + $0x110] sm:$0xff]  }
 0x10f   :  { %2096 = vmatpush3.bf16.msra.mxu1 %v2293_v60  ;;  %2114 = vmatpush3.bf16.msra.mxu0 %v2294_v61  ;;  %v2353_v60 = vld [vmem:[%s2978_s5 + $0x158] sm:$0xff]   ;;  %v2355_v61 = vld [vmem:[%s2978_s5 + $0x160] sm:$0xff]  }
 0x110   :  { %2097 = vmatprep.subr.bf16.mxu1 %v2295_v62  ;;  %2115 = vmatprep.subr.bf16.mxu0 %v2296_v0  ;;  %v2356_v62 = vld [vmem:[%s2978_s5 + $0x120] sm:$0xff]   ;;  %v2358_v0 = vld [vmem:[%s2978_s5 + $0x128] sm:$0xff]  }
 0x113   :  { %2098 = vmatpush3.bf16.msra.mxu1 %v2297_v1  ;;  %2116 = vmatpush3.bf16.msra.mxu0 %v2298_v4  ;;  %v2359_v1 = vld [vmem:[%s2978_s5 + $0x170] sm:$0xff]  }
 0x114   :  { %2099 = vmatprep.subr.bf16.mxu1 %v2299_v5  ;;  %2117 = vmatprep.subr.bf16.mxu0 %v2300_v6  ;;  %v2360_v4 = vld [vmem:[%s2978_s5 + $0x130] sm:$0xff]   ;;  %v2361_v5 = vld [vmem:[%s2978_s5 + $0x178] sm:$0xff]  }
 0x115   :  { %v2362_v6 = vld [vmem:[%s2978_s5 + $0x138] sm:$0xff]  }
 0x117   :  { %2100 = vmatpush3.bf16.msra.mxu1 %v2301_v7  ;;  %2118 = vmatpush3.bf16.msra.mxu0 %v2302_v8 }
 0x118   :  { %2101 = vmatprep.subr.bf16.mxu1 %v2303_v9  ;;  %2119 = vmatprep.subr.bf16.mxu0 %v2304_v11 }
 0x11b   :  { %2102 = vmatpush3.bf16.msra.mxu1 %v2305_v12  ;;  %2120 = vmatpush3.bf16.msra.mxu0 %v2306_v13 }
 0x11c   :  { %2103 = vmatprep.subr.bf16.mxu1 %v2307_v14  ;;  %2121 = vmatprep.subr.bf16.mxu0 %v2308_v16 }
 0x11f   :  { %2104 = vmatpush3.bf16.msra.mxu1 %v2309_v17  ;;  %2122 = vmatpush3.bf16.msra.mxu0 %v2310_v18 }
 0x120   :  { %2123 = vmatprep.subr.bf16.mxu0 %v2311_v19  ;;  %2133 = vmatprep.subr.bf16.mxu1 %v2312_v20 }
 0x122   :  { %1936 = vmatmul.mubr.msk.bf16.vlgmr.msra.gmra.mrb[8].mxu1 %vm2585_vm6, %v2364_v3 }
 0x123   :  { %2124 = vmatpush3.bf16.msra.mxu0 %v2313_v21  ;;  %2134 = vmatpush3.bf16.msra.mxu1 %v2314_v22 }
 0x124   :  { %1990 = vmatprep.mubr.msk.bf16.mxu1 %vm2560_vm3, %v2364_v3  ;;  %2125 = vmatprep.subr.bf16.mxu0 %v2315_v23 }
 0x125   :  { %2135 = vmatprep.subr.bf16.mxu1 %v2316_v24 }
 0x127   :  { %2126 = vmatpush3.bf16.msra.mxu0 %v2317_v25  ;;  %2136 = vmatpush3.bf16.msra.mxu1 %v2318_v26 }
 0x128   :  { %2137 = vmatprep.subr.bf16.mxu1 %v2319_v27  ;;  %2155 = vmatprep.subr.bf16.mxu0 %v2320_v28 }
 0x12a   :  { %1940 = vmatmul.mubr.msk.bf16.vlgmr.msra.gmra.mrb[20].mxu0 %vm2685_vm12, %v2364_v3 }
 0x12b   :  { %2138 = vmatpush3.bf16.msra.mxu1 %v2321_v29  ;;  %2156 = vmatpush3.bf16.msra.mxu0 %v2322_v63 }
 0x12c   :  { %1994 = vmatprep.mubr.msk.bf16.mxu0 %vm2596_vm8, %v2364_v3  ;;  %2139 = vmatprep.subr.bf16.mxu1 %v2323_v30 }
 0x12d   :  { %2157 = vmatprep.subr.bf16.mxu0 %v2324_v32 }
 0x12f   :  { %2140 = vmatpush3.bf16.msra.mxu1 %v2325_v33  ;;  %2158 = vmatpush3.bf16.msra.mxu0 %v2326_v34 }
 0x130   :  { %2141 = vmatprep.subr.bf16.mxu1 %v2327_v35  ;;  %2159 = vmatprep.subr.bf16.mxu0 %v2328_v36 }
 0x133   :  { %2142 = vmatpush3.bf16.msra.mxu1 %v2329_v37  ;;  %2160 = vmatpush3.bf16.msra.mxu0 %v2330_v15 }
 0x134   :  { %2143 = vmatprep.subr.bf16.mxu1 %v2331_v38  ;;  %2161 = vmatprep.subr.bf16.mxu0 %v2332_v39 }
 0x137   :  { %2144 = vmatpush3.bf16.msra.mxu1 %v2333_v40  ;;  %2162 = vmatpush3.bf16.msra.mxu0 %v2334_v41 }
 0x138   :  { %2145 = vmatprep.subr.bf16.mxu1 %v2335_v42  ;;  %2163 = vmatprep.subr.bf16.mxu0 %v2336_v43 }
 0x13b   :  { %2146 = vmatpush3.bf16.msra.mxu1 %v2337_v44  ;;  %2164 = vmatpush3.bf16.msra.mxu0 %v2338_v45 }
 0x13c   :  { %2147 = vmatprep.subr.bf16.mxu1 %v2339_v46  ;;  %2165 = vmatprep.subr.bf16.mxu0 %v2340_v48 }
 0x13f   :  { %2148 = vmatpush3.bf16.msra.mxu1 %v2341_v49  ;;  %2166 = vmatpush3.bf16.msra.mxu0 %v2342_v50 }
 0x140   :  { %2167 = vmatprep.subr.bf16.mxu0 %v2343_v51  ;;  %2177 = vmatprep.subr.bf16.mxu1 %v2344_v52 }
 0x142   :  { %1992 = vmatmul.mubr.msk.bf16.vlgmr.msra.gmra.mrb[12].mxu1 %vm2567_vm4, %v2364_v3 }
 0x143   :  { %2168 = vmatpush3.bf16.msra.mxu0 %v2345_v53  ;;  %2178 = vmatpush3.bf16.msra.mxu1 %v2346_v54 }
 0x144   :  { %1998 = vmatprep.mubr.msk.bf16.mxu1 %vm2640_vm10, %v2364_v3  ;;  %2169 = vmatprep.subr.bf16.mxu0 %v2347_v55 }
 0x145   :  { %2179 = vmatprep.subr.bf16.mxu1 %v2348_v56 }
 0x147   :  { %2170 = vmatpush3.bf16.msra.mxu0 %v2349_v57  ;;  %2180 = vmatpush3.bf16.msra.mxu1 %v2350_v58 }
 0x148   :  { %2181 = vmatprep.subr.bf16.mxu1 %v2351_v2 }
 0x14a   :  { %1996 = vmatmul.mubr.msk.bf16.vlgmr.msra.gmra.mrb[24].mxu0 %vm2585_vm6, %v2364_v3 }
 0x14b   :  { %2182 = vmatpush3.bf16.msra.mxu1 %v2352_v59 }
 0x14c   :  { %2183 = vmatprep.subr.bf16.mxu1 %v2353_v60 }
 0x14f   :  { %2184 = vmatpush3.bf16.msra.mxu1 %v2354_v31 }
 0x150   :  { %2185 = vmatprep.subr.bf16.mxu1 %v2355_v61 }
 0x153   :  { %2186 = vmatpush3.bf16.msra.mxu1 %v2356_v62 }
 0x154   :  { %2187 = vmatprep.subr.bf16.mxu1 %v2357_v10 }
 0x157   :  { %2188 = vmatpush3.bf16.msra.mxu1 %v2358_v0 }
 0x158   :  { %2189 = vmatprep.subr.bf16.mxu1 %v2359_v1 }
 0x15b   :  { %2190 = vmatpush3.bf16.msra.mxu1 %v2360_v4 }
 0x15c   :  { %2191 = vmatprep.subr.bf16.mxu1 %v2361_v5 }
 0x15f   :  { %2192 = vmatpush3.bf16.msra.mxu1 %v2362_v6 }
 0x162   :  { %2000 = vmatmul.mubr.msk.bf16.vlgmr.msra.gmra.mrb[16].mxu1 %vm2685_vm12, %v2364_v3 }
 0x1b5   :  { %v2017_v7 = vpop.f32.mrb[0].mxu1 }
 0x1b6   :  { %v2018_v8 = vpop.f32.mrb[1].mxu1 }
 0x1b7   :  { %v2019_v9 = vadd.f32 %v2018_v8, %v2017_v7  ;;  %v2020_v11 = vpop.f32.mrb[2].mxu1 }
 0x1b8   :  { %v2021_v12 = vpop.f32.mrb[3].mxu1 }
 0x1bd   :  { %v2039_v13 = vpop.f32.mrb[12].mxu0 }
 0x1be   :  { %v2040_v14 = vpop.f32.mrb[13].mxu0 }
 0x1bf   :  { %v2041_v16 = vadd.f32 %v2040_v14, %v2039_v13  ;;  %v2042_v17 = vpop.f32.mrb[14].mxu0 }
 0x1c0   :  { %v2043_v18 = vpop.f32.mrb[15].mxu0 }
 0x1c1   :  { %v837_v19 = vadd.f32 %v2041_v16, %v2019_v9 }
 0x1d5   :  { %v2061_v20 = vpop.f32.mrb[4].mxu1 }
 0x1d6   :  { %v2062_v21 = vpop.f32.mrb[5].mxu1 }
 0x1d7   :  { %v2063_v22 = vadd.f32 %v2062_v21, %v2061_v20  ;;  %v2064_v23 = vpop.f32.mrb[6].mxu1 }
 0x1d8   :  { %v2065_v24 = vpop.f32.mrb[7].mxu1 }
 0x1d9   :  { %v877_v25 = vadd.f32 %v2063_v22, %v837_v19 }
 0x1dd   :  { %v2083_v26 = vpop.f32.mrb[16].mxu0 }
 0x1de   :  { %v2084_v47 = vpop.f32.mrb[17].mxu0 }
 0x1df   :  { %v2085_v3 = vadd.f32 %v2084_v47, %v2083_v26  ;;  %v2086_v27 = vpop.f32.mrb[18].mxu0 }
 0x1e0   :  { %v2087_v28 = vpop.f32.mrb[19].mxu0 }
 0x1e1   :  { %v1205_v29 = vadd.f32 %v2085_v3, %v877_v25 }
 0x1f5   :  { %v2105_v63 = vpop.f32.mrb[8].mxu1 }
 0x1f6   :  { %v2106_v30 = vpop.f32.mrb[9].mxu1 }
 0x1f7   :  { %v2107_v32 = vadd.f32 %v2106_v30, %v2105_v63  ;;  %v2108_v33 = vpop.f32.mrb[10].mxu1 }
 0x1f8   :  { %v2109_v34 = vpop.f32.mrb[11].mxu1 }
 0x1f9   :  { %v1245_v35 = vadd.f32 %v2107_v32, %v1205_v29 }
 0x1fd   :  { %v2127_v36 = vpop.f32.mrb[20].mxu0 }
 0x1fe   :  { %v2128_v37 = vpop.f32.mrb[21].mxu0 }
 0x1ff   :  { %v2129_v15 = vadd.f32 %v2128_v37, %v2127_v36  ;;  %v2130_v38 = vpop.f32.mrb[22].mxu0 }
 0x200   :  { %v2131_v39 = vpop.f32.mrb[23].mxu0 }
 0x201   :  { %v1285_v40 = vadd.f32 %v2129_v15, %v1245_v35 }
 0x215   :  { %v2149_v41 = vpop.f32.mrb[12].mxu1 }
 0x216   :  { %v2150_v42 = vpop.f32.mrb[13].mxu1 }
 0x217   :  { %v2151_v43 = vadd.f32 %v2150_v42, %v2149_v41  ;;  %v2152_v44 = vpop.f32.mrb[14].mxu1 }
 0x218   :  { %v2153_v45 = vpop.f32.mrb[15].mxu1 }
 0x21d   :  { %v2171_v46 = vpop.f32.mrb[24].mxu0 }
 0x21e   :  { %v2172_v48 = vpop.f32.mrb[25].mxu0 }
 0x21f   :  { %v2173_v49 = vadd.f32 %v2172_v48, %v2171_v46  ;;  %v2174_v50 = vpop.f32.mrb[26].mxu0 }
 0x220   :  { %v2175_v51 = vpop.f32.mrb[27].mxu0 }
 0x221   :  { %v1749_v52 = vadd.f32 %v2173_v49, %v2151_v43 }
 0x235   :  { %v2193_v53 = vpop.f32.mrb[16].mxu1 }
 0x236   :  { %v2194_v54 = vpop.f32.mrb[17].mxu1 }
 0x237   :  { %v2195_v55 = vadd.f32 %v2194_v54, %v2193_v53  ;;  %v2196_v56 = vpop.f32.mrb[18].mxu1 }
 0x238   :  { %v2197_v57 = vpop.f32.mrb[19].mxu1 }
 0x239   :  { %v1789_v58 = vadd.f32 %v2195_v55, %v1749_v52 }
 0x23b   :  { %v1794_v2 = vadd.f32 %v1789_v58, %v1285_v40 }
 0x23d   :  { %1795 = vst [vmem:[%s2980_s6] sm:$0xff] %v1794_v2 }

</bundles_post_ra>
